<compile_context>
chip_gen: v7x
topology: tpu7x:2x2x1
jax: 0.10.0
libtpu: 0.0.40
codegen_flags: <defaults>
</compile_context>

<pallas_src>
import functools

import jax
import jax.numpy as jnp
import numpy as np
from jax.experimental import pallas as pl
from jax.experimental.pallas import tpu as pltpu

BN_EPS = 1e-5

# Matmul tile caps (multiples of 128).  With double buffering these use only a
# few MiB of VMEM, leaving headroom even on v7x (64 MiB physical).
TM, TN, TK = 512, 256, 256
NORM_TM = 512
VMEM_LIMIT = 48 * 1024 * 1024


# ----------------------------------------------------------------------------
# Small helpers (padding / tile selection)
# ----------------------------------------------------------------------------
def _round_up(x, m):
    return -(-x // m) * m


def _pad_and_tile(dim, cap, unit=128):
    """Pad `dim` to a tileable size and return (padded_dim, tile)."""
    if dim >= cap:
        return _round_up(dim, cap), cap
    padded = _round_up(dim, unit)
    return padded, padded


def _divisor_tile(padded, cap, unit=128):
    t = min(cap, padded)
    while padded % t:
        t -= unit
    return t


def _pad2d(a, rows, cols):
    return jnp.pad(a, ((0, rows - a.shape[0]), (0, cols - a.shape[1])))


# ----------------------------------------------------------------------------
# Pallas kernels
# ----------------------------------------------------------------------------
def _mm_stats_kernel(x_ref, w_ref, y_ref, stats_ref, acc_ref):
    # grid = (i: M tiles, j: N tiles, k: K tiles); k innermost (reduction).
    k = pl.program_id(2)
    nk = pl.num_programs(2)

    @pl.when(k == 0)
    def _():
        acc_ref[...] = jnp.zeros_like(acc_ref)

    acc_ref[...] += jnp.dot(x_ref[...], w_ref[...],
                            preferred_element_type=jnp.float32)

    @pl.when(k == nk - 1)
    def _():
        y = acc_ref[...]
        y_ref[...] = y
        # Per-channel partial sums for this M tile (BN stats fused into the
        # matmul epilogue -> no extra read of y later).
        ps = jnp.sum(y, axis=0, keepdims=True)            # (1, tn)
        pss = jnp.sum(y * y, axis=0, keepdims=True)       # (1, tn)
        fill = jnp.zeros((6, y.shape[1]), jnp.float32)
        stats_ref[...] = jnp.concatenate([ps, pss, fill], axis=0)


def _scale_shift_relu_kernel(y_ref, s_ref, t_ref, o_ref):
    # ReLU(y * scale + shift); scale/shift are per-channel (1, C) rows.
    o_ref[...] = jnp.maximum(y_ref[...] * s_ref[...] + t_ref[...], 0.0)


def _scale_shift_res_relu_kernel(y_ref, r_ref, s_ref, t_ref, sr_ref, tr_ref,
                                 o_ref):
    # ReLU( bn2(y) + bn_sc(res) ) with both BNs pre-folded into scale/shift.
    main = y_ref[...] * s_ref[...] + t_ref[...]
    res = r_ref[...] * sr_ref[...] + tr_ref[...]
    o_ref[...] = jnp.maximum(main + res, 0.0)


# ----------------------------------------------------------------------------
# Pallas wrappers
# ----------------------------------------------------------------------------
def pallas_matmul_stats(x_col, w_col):
    """Tiled bf16 matmul with fused per-channel sum / sum-of-squares.

    x_col: (M, K) f32, w_col: (K, Cout) f32.
    Returns:
      y_pad : (Mp, Np) f32   (zero-padded output)
      stats : (8 * M_tiles, Np) f32, rows (0,1) of each 8-row group are the
              per-tile sum / sum-of-squares of y over rows.
    """
    M, K = x_col.shape
    K2, Nc = w_col.shape
    assert K == K2
    Mp, tm = _pad_and_tile(M, TM)
    Kp, tk = _pad_and_tile(K, TK)
    Np, tn = _pad_and_tile(Nc, TN)

    x_p = _pad2d(x_col, Mp, Kp).astype(jnp.bfloat16)
    w_p = _pad2d(w_col, Kp, Np).astype(jnp.bfloat16)

    nm, nn, nk = Mp // tm, Np // tn, Kp // tk
    cost = pl.CostEstimate(
        flops=2 * Mp * Kp * Np,
        transcendentals=0,
        bytes_accessed=x_p.size * 2 + w_p.size * 2 + Mp * Np * 4 + 8 * nm * Np * 4,
    )

    y, stats = pl.pallas_call(
        _mm_stats_kernel,
        out_shape=(jax.ShapeDtypeStruct((Mp, Np), jnp.float32),
                   jax.ShapeDtypeStruct((8 * nm, Np), jnp.float32)),
        grid_spec=pltpu.PrefetchScalarGridSpec(
            num_scalar_prefetch=0,
            grid=(nm, nn, nk),
            in_specs=[
                pl.BlockSpec((tm, tk), lambda i, j, k: (i, k)),
                pl.BlockSpec((tk, tn), lambda i, j, k: (k, j)),
            ],
            out_specs=[
                pl.BlockSpec((tm, tn), lambda i, j, k: (i, j)),
                pl.BlockSpec((8, tn), lambda i, j, k: (i, j)),
            ],
            scratch_shapes=[pltpu.VMEM((tm, tn), jnp.float32)],
        ),
        compiler_params=pltpu.CompilerParams(
            dimension_semantics=("parallel", "parallel", "arbitrary"),
            vmem_limit_bytes=VMEM_LIMIT,
        ),
        cost_estimate=cost,
    )(x_p, w_p)
    return y, stats


def bn_scale_shift(stats, count, gamma, beta):
    """Reduce per-tile stats and fold BN into per-channel scale/shift rows."""
    cp = stats.shape[-1]
    st = stats.reshape(-1, 8, cp)
    total = jnp.sum(st[:, 0, :], axis=0)
    total_sq = jnp.sum(st[:, 1, :], axis=0)
    mean = total / count
    var = jnp.maximum(total_sq / count - mean * mean, 0.0)
    inv = jax.lax.rsqrt(var + BN_EPS)
    g = jnp.pad(gamma.astype(jnp.float32), (0, cp - gamma.shape[0]))
    b = jnp.pad(beta.astype(jnp.float32), (0, cp - beta.shape[0]))
    scale = g * inv
    shift = b - mean * scale
    return scale.reshape(1, cp), shift.reshape(1, cp)


def pallas_bn_relu(y_pad, scale, shift):
    Mp, Np = y_pad.shape
    tm = _divisor_tile(Mp, NORM_TM)
    row_spec = pl.BlockSpec((tm, Np), lambda i: (i, 0))
    vec_spec = pl.BlockSpec((1, Np), lambda i: (0, 0))   # loaded once, resident
    return pl.pallas_call(
        _scale_shift_relu_kernel,
        out_shape=jax.ShapeDtypeStruct((Mp, Np), jnp.float32),
        grid_spec=pltpu.PrefetchScalarGridSpec(
            num_scalar_prefetch=0,
            grid=(Mp // tm,),
            in_specs=[row_spec, vec_spec, vec_spec],
            out_specs=row_spec,
        ),
        compiler_params=pltpu.CompilerParams(
            dimension_semantics=("parallel",),
            vmem_limit_bytes=VMEM_LIMIT,
        ),
    )(y_pad, scale, shift)


def pallas_bn_add_relu(y_pad, res_pad, scale, shift, res_scale, res_shift):
    Mp, Np = y_pad.shape
    tm = _divisor_tile(Mp, NORM_TM)
    row_spec = pl.BlockSpec((tm, Np), lambda i: (i, 0))
    vec_spec = pl.BlockSpec((1, Np), lambda i: (0, 0))
    return pl.pallas_call(
        _scale_shift_res_relu_kernel,
        out_shape=jax.ShapeDtypeStruct((Mp, Np), jnp.float32),
        grid_spec=pltpu.PrefetchScalarGridSpec(
            num_scalar_prefetch=0,
            grid=(Mp // tm,),
            in_specs=[row_spec, row_spec, vec_spec, vec_spec, vec_spec, vec_spec],
            out_specs=row_spec,
        ),
        compiler_params=pltpu.CompilerParams(
            dimension_semantics=("parallel",),
            vmem_limit_bytes=VMEM_LIMIT,
        ),
    )(y_pad, res_pad, scale, shift, res_scale, res_shift)


# ----------------------------------------------------------------------------
# Glue: im2col + weight reshaping (plain JAX)
# ----------------------------------------------------------------------------
def im2col(x_nhwc, ksize, stride, pad):
    """Returns ((N*Ho*Wo, k*k*C), (Ho, Wo)); feature order (kh, kw, c)."""
    N, H, W, C = x_nhwc.shape
    xp = jnp.pad(x_nhwc, ((0, 0), (pad, pad), (pad, pad), (0, 0)))
    Ho = (H + 2 * pad - ksize) // stride + 1
    Wo = (W + 2 * pad - ksize) // stride + 1
    patches = []
    for dh in range(ksize):
        for dw in range(ksize):
            patches.append(
                xp[:, dh:dh + stride * Ho:stride, dw:dw + stride * Wo:stride, :])
    col = jnp.concatenate(patches, axis=-1)               # (N, Ho, Wo, k*k*C)
    return col.reshape(N * Ho * Wo, ksize * ksize * C), (Ho, Wo)


def conv_weight_to_col(w_oihw):
    """(Cout, Cin, kh, kw) -> (kh*kw*Cin, Cout), matching im2col feature order."""
    co, ci, kh, kw = w_oihw.shape
    return jnp.transpose(w_oihw, (2, 3, 1, 0)).reshape(kh * kw * ci, co)


# ----------------------------------------------------------------------------
# BasicBlock forward (Pallas hot paths)
# ----------------------------------------------------------------------------
@functools.partial(jax.jit, static_argnames=("in_planes", "planes", "stride"))
def basic_block_forward(x_nchw, params, *, in_planes, planes, stride):
    x = jnp.transpose(x_nchw, (0, 2, 3, 1)).astype(jnp.float32)  # NCHW -> NHWC
    N = x.shape[0]
    downsample = (stride != 1) or (in_planes != planes)

    # conv1 (3x3, stride, pad 1) -> bn1 -> relu
    xcol1, (Ho, Wo) = im2col(x, 3, stride, 1)
    m1 = xcol1.shape[0]
    y1, st1 = pallas_matmul_stats(xcol1, conv_weight_to_col(params["w1"]))
    s1, t1 = bn_scale_shift(st1, m1, params["g1"], params["b1"])
    out1 = pallas_bn_relu(y1, s1, t1)[:m1, :planes].reshape(N, Ho, Wo, planes)

    # conv2 (3x3, stride 1, pad 1); bn2 is fused with residual + relu below
    xcol2, _ = im2col(out1, 3, 1, 1)
    m2 = xcol2.shape[0]
    y2, st2 = pallas_matmul_stats(xcol2, conv_weight_to_col(params["w2"]))
    s2, t2 = bn_scale_shift(st2, m2, params["g2"], params["b2"])
    Mp, Cp = y2.shape

    # shortcut
    if downsample:
        xs = x[:, ::stride, ::stride, :].reshape(-1, in_planes)  # 1x1 stride-s conv
        ysc, stsc = pallas_matmul_stats(xs, conv_weight_to_col(params["wsc"]))
        ssc, tsc = bn_scale_shift(stsc, xs.shape[0], params["gsc"], params["bsc"])
        res = ysc
    else:
        res = _pad2d(x.reshape(-1, in_planes), Mp, Cp)
        ssc = jnp.ones((1, Cp), jnp.float32)
        tsc = jnp.zeros((1, Cp), jnp.float32)
    assert res.shape == (Mp, Cp)

    out = pallas_bn_add_relu(y2, res, s2, t2, ssc, tsc)
    out = out[:m2, :planes].reshape(N, Ho, Wo, planes)
    return jnp.transpose(out, (0, 3, 1, 2))                # NHWC -> NCHW


# ----------------------------------------------------------------------------
# Pure-JAX reference (bf16 conv operands to match the MXU path)
# ----------------------------------------------------------------------------
def _ref_conv(x_nhwc, w_oihw, stride, pad):
    w_hwio = jnp.transpose(w_oihw, (2, 3, 1, 0))
    return jax.lax.conv_general_dilated(
        x_nhwc.astype(jnp.bfloat16), w_hwio.astype(jnp.bfloat16),
        (stride, stride), [(pad, pad), (pad, pad)],
        dimension_numbers=("NHWC", "HWIO", "NHWC"),
        preferred_element_type=jnp.float32)


def _ref_bn(y, g, b):
    mean = y.mean(axis=(0, 1, 2))
    var = jnp.square(y - mean).mean(axis=(0, 1, 2))
    return (y - mean) * jax.lax.rsqrt(var + BN_EPS) * g + b


def basic_block_ref(x_nchw, params, in_planes, planes, stride):
    x = jnp.transpose(x_nchw, (0, 2, 3, 1)).astype(jnp.float32)
    out = jax.nn.relu(_ref_bn(_ref_conv(x, params["w1"], stride, 1),
                              params["g1"], params["b1"]))
    out = _ref_bn(_ref_conv(out, params["w2"], 1, 1), params["g2"], params["b2"])
    if (stride != 1) or (in_planes != planes):
        sc = _ref_bn(_ref_conv(x, params["wsc"], stride, 0),
                     params["gsc"], params["bsc"])
    else:
        sc = x
    return jnp.transpose(jax.nn.relu(out + sc), (0, 3, 1, 2))


# ----------------------------------------------------------------------------
# Parameter init (deterministic, matches nn module shapes)
# ----------------------------------------------------------------------------
def init_params(key, in_planes, planes, stride):
    k1, k2, k3 = jax.random.split(key, 3)
    std1 = (2.0 / (in_planes * 9)) ** 0.5
    std2 = (2.0 / (planes * 9)) ** 0.5
    params = {
        "w1": std1 * jax.random.normal(k1, (planes, in_planes, 3, 3), jnp.float32),
        "g1": jnp.ones((planes,), jnp.float32),
        "b1": jnp.zeros((planes,), jnp.float32),
        "w2": std2 * jax.random.normal(k2, (planes, planes, 3, 3), jnp.float32),
        "g2": jnp.ones((planes,), jnp.float32),
        "b2": jnp.zeros((planes,), jnp.float32),
    }
    if (stride != 1) or (in_planes != planes):
        stds = (2.0 / in_planes) ** 0.5
        params["wsc"] = stds * jax.random.normal(
            k3, (planes, in_planes, 1, 1), jnp.float32)
        params["gsc"] = jnp.ones((planes,), jnp.float32)
        params["bsc"] = jnp.zeros((planes,), jnp.float32)
    return params


if __name__ == "__main__":
    # Downsample configuration: batch=2, in_planes=4, planes=8, stride=2, 16x16.
    in_planes, planes, stride = 4, 8, 2
    key = jax.random.PRNGKey(0)
    kx, kp = jax.random.split(key)
    x = jax.random.normal(kx, (2, in_planes, 16, 16), jnp.float32)   # NCHW
    params = init_params(kp, in_planes, planes, stride)

    out = basic_block_forward(x, params, in_planes=in_planes, planes=planes,
                              stride=stride)
    out = jax.block_until_ready(out)
    assert out.shape == (2, planes, 8, 8), out.shape

    ref = jax.block_until_ready(basic_block_ref(x, params, in_planes, planes, stride))
    np.testing.assert_allclose(np.asarray(out), np.asarray(ref),
                               atol=1e-2, rtol=1e-2)

    # Identity-shortcut configuration (stride=1, in_planes == planes).
    params_id = init_params(kp, planes, planes, 1)
    x2 = jax.random.normal(kx, (2, planes, 16, 16), jnp.float32)
    out2 = jax.block_until_ready(
        basic_block_forward(x2, params_id, in_planes=planes, planes=planes, stride=1))
    ref2 = jax.block_until_ready(basic_block_ref(x2, params_id, planes, planes, 1))
    np.testing.assert_allclose(np.asarray(out2), np.asarray(ref2),
                               atol=1e-2, rtol=1e-2)

    print("KERNEL_OK")
</pallas_src>

<mosaic_0001>
module attributes {stable_mosaic.version = 11 : i64} {
  func.func @_mm_stats_kernel(%arg0: i32, %arg1: i32, %arg2: i32, %arg3: memref<128x128xbf16, #tpu.memory_space<vmem>>, %arg4: memref<128x128xbf16, #tpu.memory_space<vmem>>, %arg5: memref<128x128xf32, #tpu.memory_space<vmem>>, %arg6: memref<8x128xf32, #tpu.memory_space<vmem>>, %arg7: memref<128x128xf32, #tpu.memory_space<vmem>>) attributes {dimension_semantics = [#tpu.dimension_semantics<parallel>, #tpu.dimension_semantics<parallel>, #tpu.dimension_semantics<arbitrary>], iteration_bounds = array<i64: 1, 1, 1>, scalar_prefetch = 0 : i64, scratch_operands = 1 : i64, tpu.core_type = #tpu.core_type<tc>, window_params = [{transform_indices = @transform_0, window_bounds = array<i64: 128, 128>}, {transform_indices = @transform_1, window_bounds = array<i64: 128, 128>}, {transform_indices = @transform_2, window_bounds = array<i64: 128, 128>}, {transform_indices = @transform_3, window_bounds = array<i64: 8, 128>}]} {
    %c0_i32 = arith.constant 0 : i32
    %0 = arith.cmpi eq, %arg2, %c0_i32 : i32
    %1 = arith.extui %0 : i1 to i32
    %c0_i32_0 = arith.constant 0 : i32
    %2 = arith.cmpi ne, %1, %c0_i32_0 : i32
    scf.if %2 {
      %cst_10 = arith.constant 0.000000e+00 : f32
      %12 = vector.broadcast %cst_10 : f32 to vector<128x128xf32>
      %c0_11 = arith.constant 0 : index
      %c0_12 = arith.constant 0 : index
      %13 = vector.load %arg7[%c0_11, %c0_12] : memref<128x128xf32, #tpu.memory_space<vmem>>, vector<128x128xf32>
      tpu.vector_store %arg7[%c0_11, %c0_12], %12 {strides = array<i32>} : memref<128x128xf32, #tpu.memory_space<vmem>>, vector<128x128xf32>,
    } else {
    }
    %c0 = arith.constant 0 : index
    %c0_1 = arith.constant 0 : index
    %3 = vector.load %arg7[%c0, %c0_1] : memref<128x128xf32, #tpu.memory_space<vmem>>, vector<128x128xf32>
    %c0_2 = arith.constant 0 : index
    %c0_3 = arith.constant 0 : index
    %4 = vector.load %arg3[%c0_2, %c0_3] : memref<128x128xbf16, #tpu.memory_space<vmem>>, vector<128x128xbf16>
    %c0_4 = arith.constant 0 : index
    %c0_5 = arith.constant 0 : index
    %5 = vector.load %arg4[%c0_4, %c0_5] : memref<128x128xbf16, #tpu.memory_space<vmem>>, vector<128x128xbf16>
    %cst = arith.constant dense<0.000000e+00> : vector<128x128xf32>
    %6 = tpu.matmul %4, %5, %cst {dimension_numbers = #tpu.dot_dimension_numbers<[1], [0], [0], [1], [0, 0, 1, 1], [], []>} : vector<128x128xbf16>, vector<128x128xbf16>, vector<128x128xf32> -> vector<128x128xf32>
    %7 = arith.addf %3, %6 : vector<128x128xf32>
    %c0_6 = arith.constant 0 : index
    %c0_7 = arith.constant 0 : index
    %8 = vector.load %arg7[%c0_6, %c0_7] : memref<128x128xf32, #tpu.memory_space<vmem>>, vector<128x128xf32>
    tpu.vector_store %arg7[%c0_6, %c0_7], %7 {strides = array<i32>} : memref<128x128xf32, #tpu.memory_space<vmem>>, vector<128x128xf32>,
    %c0_i32_8 = arith.constant 0 : i32
    %9 = arith.cmpi eq, %arg2, %c0_i32_8 : i32
    %10 = arith.extui %9 : i1 to i32
    %c0_i32_9 = arith.constant 0 : i32
    %11 = arith.cmpi ne, %10, %c0_i32_9 : i32
    scf.if %11 {
      %c0_10 = arith.constant 0 : index
      %c0_11 = arith.constant 0 : index
      %12 = vector.load %arg7[%c0_10, %c0_11] : memref<128x128xf32, #tpu.memory_space<vmem>>, vector<128x128xf32>
      %c0_12 = arith.constant 0 : index
      %c0_13 = arith.constant 0 : index
      %13 = vector.load %arg5[%c0_12, %c0_13] : memref<128x128xf32, #tpu.memory_space<vmem>>, vector<128x128xf32>
      tpu.vector_store %arg5[%c0_12, %c0_13], %12 {strides = array<i32>} : memref<128x128xf32, #tpu.memory_space<vmem>>, vector<128x128xf32>,
      %cst_14 = arith.constant dense<0.000000e+00> : vector<128xf32>
      %14 = vector.multi_reduction <add>, %12, %cst_14 [0] : vector<128x128xf32> to vector<128xf32>
      %15 = vector.shape_cast %14 : vector<128xf32> to vector<1x128xf32>
      %16 = arith.mulf %12, %12 : vector<128x128xf32>
      %cst_15 = arith.constant dense<0.000000e+00> : vector<128xf32>
      %17 = vector.multi_reduction <add>, %16, %cst_15 [0] : vector<128x128xf32> to vector<128xf32>
      %18 = vector.shape_cast %17 : vector<128xf32> to vector<1x128xf32>
      %cst_16 = arith.constant 0.000000e+00 : f32
      %19 = vector.broadcast %cst_16 : f32 to vector<6x128xf32>
      %20 = tpu.concatenate %15, %18, %19 in 0 : vector<1x128xf32>, vector<1x128xf32>, vector<6x128xf32> -> vector<8x128xf32>
      %c0_17 = arith.constant 0 : index
      %c0_18 = arith.constant 0 : index
      %21 = vector.load %arg6[%c0_17, %c0_18] : memref<8x128xf32, #tpu.memory_space<vmem>>, vector<8x128xf32>
      tpu.vector_store %arg6[%c0_17, %c0_18], %20 {strides = array<i32>} : memref<8x128xf32, #tpu.memory_space<vmem>>, vector<8x128xf32>,
    } else {
    }
    return
  }
  func.func @transform_0(%arg0: i32, %arg1: i32, %arg2: i32) -> (i32, i32) {
    %c0_i32 = arith.constant 0 : i32
    return %arg0, %arg2 : i32, i32
  }
  func.func @transform_1(%arg0: i32, %arg1: i32, %arg2: i32) -> (i32, i32) {
    %c0_i32 = arith.constant 0 : i32
    return %arg2, %arg1 : i32, i32
  }
  func.func @transform_2(%arg0: i32, %arg1: i32, %arg2: i32) -> (i32, i32) {
    %c0_i32 = arith.constant 0 : i32
    return %arg0, %arg1 : i32, i32
  }
  func.func @transform_3(%arg0: i32, %arg1: i32, %arg2: i32) -> (i32, i32) {
    %c0_i32 = arith.constant 0 : i32
    return %arg0, %arg1 : i32, i32
  }
}

module attributes {stable_mosaic.version = 11 : i64} {
  func.func @_scale_shift_relu_kernel(%arg0: i32, %arg1: memref<128x128xf32, #tpu.memory_space<vmem>>, %arg2: memref<1x128xf32, #tpu.memory_space<vmem>>, %arg3: memref<1x128xf32, #tpu.memory_space<vmem>>, %arg4: memref<128x128xf32, #tpu.memory_space<vmem>>) attributes {dimension_semantics = [#tpu.dimension_semantics<parallel>], iteration_bounds = array<i64: 1>, scalar_prefetch = 0 : i64, scratch_operands = 0 : i64, tpu.core_type = #tpu.core_type<tc>, window_params = [{transform_indices = @transform_0, window_bounds = array<i64: 128, 128>}, {pipeline_mode = #tpu.pipeline_mode<synchronous>, transform_indices = @transform_1, window_bounds = array<i64: 1, 128>}, {pipeline_mode = #tpu.pipeline_mode<synchronous>, transform_indices = @transform_2, window_bounds = array<i64: 1, 128>}, {transform_indices = @transform_3, window_bounds = array<i64: 128, 128>}]} {
    %c0 = arith.constant 0 : index
    %c0_0 = arith.constant 0 : index
    %0 = vector.load %arg1[%c0, %c0_0] : memref<128x128xf32, #tpu.memory_space<vmem>>, vector<128x128xf32>
    %c0_1 = arith.constant 0 : index
    %c0_2 = arith.constant 0 : index
    %1 = vector.load %arg2[%c0_1, %c0_2] : memref<1x128xf32, #tpu.memory_space<vmem>>, vector<1x128xf32>
    %2 = vector.broadcast %1 : vector<1x128xf32> to vector<128x128xf32>
    %3 = arith.mulf %0, %2 : vector<128x128xf32>
    %c0_3 = arith.constant 0 : index
    %c0_4 = arith.constant 0 : index
    %4 = vector.load %arg3[%c0_3, %c0_4] : memref<1x128xf32, #tpu.memory_space<vmem>>, vector<1x128xf32>
    %5 = vector.broadcast %4 : vector<1x128xf32> to vector<128x128xf32>
    %6 = arith.addf %3, %5 : vector<128x128xf32>
    %cst = arith.constant 0.000000e+00 : f32
    %7 = vector.broadcast %cst : f32 to vector<128x128xf32>
    %8 = arith.maximumf %6, %7 : vector<128x128xf32>
    %c0_5 = arith.constant 0 : index
    %c0_6 = arith.constant 0 : index
    %9 = vector.load %arg4[%c0_5, %c0_6] : memref<128x128xf32, #tpu.memory_space<vmem>>, vector<128x128xf32>
    tpu.vector_store %arg4[%c0_5, %c0_6], %8 {strides = array<i32>} : memref<128x128xf32, #tpu.memory_space<vmem>>, vector<128x128xf32>,
    return
  }
  func.func @transform_0(%arg0: i32) -> (i32, i32) {
    %c0_i32 = arith.constant 0 : i32
    %c0_i32_0 = arith.constant 0 : i32
    return %arg0, %c0_i32 : i32, i32
  }
  func.func @transform_1(%arg0: i32) -> (i32, i32) {
    %c0_i32 = arith.constant 0 : i32
    %c0_i32_0 = arith.constant 0 : i32
    %c0_i32_1 = arith.constant 0 : i32
    return %c0_i32, %c0_i32_0 : i32, i32
  }
  func.func @transform_2(%arg0: i32) -> (i32, i32) {
    %c0_i32 = arith.constant 0 : i32
    %c0_i32_0 = arith.constant 0 : i32
    %c0_i32_1 = arith.constant 0 : i32
    return %c0_i32, %c0_i32_0 : i32, i32
  }
  func.func @transform_3(%arg0: i32) -> (i32, i32) {
    %c0_i32 = arith.constant 0 : i32
    %c0_i32_0 = arith.constant 0 : i32
    return %arg0, %c0_i32 : i32, i32
  }
}

module attributes {stable_mosaic.version = 11 : i64} {
  func.func @_scale_shift_res_relu_kernel(%arg0: i32, %arg1: memref<128x128xf32, #tpu.memory_space<vmem>>, %arg2: memref<128x128xf32, #tpu.memory_space<vmem>>, %arg3: memref<1x128xf32, #tpu.memory_space<vmem>>, %arg4: memref<1x128xf32, #tpu.memory_space<vmem>>, %arg5: memref<1x128xf32, #tpu.memory_space<vmem>>, %arg6: memref<1x128xf32, #tpu.memory_space<vmem>>, %arg7: memref<128x128xf32, #tpu.memory_space<vmem>>) attributes {dimension_semantics = [#tpu.dimension_semantics<parallel>], iteration_bounds = array<i64: 1>, scalar_prefetch = 0 : i64, scratch_operands = 0 : i64, tpu.core_type = #tpu.core_type<tc>, window_params = [{transform_indices = @transform_0, window_bounds = array<i64: 128, 128>}, {transform_indices = @transform_1, window_bounds = array<i64: 128, 128>}, {pipeline_mode = #tpu.pipeline_mode<synchronous>, transform_indices = @transform_2, window_bounds = array<i64: 1, 128>}, {pipeline_mode = #tpu.pipeline_mode<synchronous>, transform_indices = @transform_3, window_bounds = array<i64: 1, 128>}, {pipeline_mode = #tpu.pipeline_mode<synchronous>, transform_indices = @transform_4, window_bounds = array<i64: 1, 128>}, {pipeline_mode = #tpu.pipeline_mode<synchronous>, transform_indices = @transform_5, window_bounds = array<i64: 1, 128>}, {transform_indices = @transform_6, window_bounds = array<i64: 128, 128>}]} {
    %c0 = arith.constant 0 : index
    %c0_0 = arith.constant 0 : index
    %0 = vector.load %arg1[%c0, %c0_0] : memref<128x128xf32, #tpu.memory_space<vmem>>, vector<128x128xf32>
    %c0_1 = arith.constant 0 : index
    %c0_2 = arith.constant 0 : index
    %1 = vector.load %arg3[%c0_1, %c0_2] : memref<1x128xf32, #tpu.memory_space<vmem>>, vector<1x128xf32>
    %2 = vector.broadcast %1 : vector<1x128xf32> to vector<128x128xf32>
    %3 = arith.mulf %0, %2 : vector<128x128xf32>
    %c0_3 = arith.constant 0 : index
    %c0_4 = arith.constant 0 : index
    %4 = vector.load %arg4[%c0_3, %c0_4] : memref<1x128xf32, #tpu.memory_space<vmem>>, vector<1x128xf32>
    %5 = vector.broadcast %4 : vector<1x128xf32> to vector<128x128xf32>
    %6 = arith.addf %3, %5 : vector<128x128xf32>
    %c0_5 = arith.constant 0 : index
    %c0_6 = arith.constant 0 : index
    %7 = vector.load %arg2[%c0_5, %c0_6] : memref<128x128xf32, #tpu.memory_space<vmem>>, vector<128x128xf32>
    %c0_7 = arith.constant 0 : index
    %c0_8 = arith.constant 0 : index
    %8 = vector.load %arg5[%c0_7, %c0_8] : memref<1x128xf32, #tpu.memory_space<vmem>>, vector<1x128xf32>
    %9 = vector.broadcast %8 : vector<1x128xf32> to vector<128x128xf32>
    %10 = arith.mulf %7, %9 : vector<128x128xf32>
    %c0_9 = arith.constant 0 : index
    %c0_10 = arith.constant 0 : index
    %11 = vector.load %arg6[%c0_9, %c0_10] : memref<1x128xf32, #tpu.memory_space<vmem>>, vector<1x128xf32>
    %12 = vector.broadcast %11 : vector<1x128xf32> to vector<128x128xf32>
    %13 = arith.addf %10, %12 : vector<128x128xf32>
    %14 = arith.addf %6, %13 : vector<128x128xf32>
    %cst = arith.constant 0.000000e+00 : f32
    %15 = vector.broadcast %cst : f32 to vector<128x128xf32>
    %16 = arith.maximumf %14, %15 : vector<128x128xf32>
    %c0_11 = arith.constant 0 : index
    %c0_12 = arith.constant 0 : index
    %17 = vector.load %arg7[%c0_11, %c0_12] : memref<128x128xf32, #tpu.memory_space<vmem>>, vector<128x128xf32>
    tpu.vector_store %arg7[%c0_11, %c0_12], %16 {strides = array<i32>} : memref<128x128xf32, #tpu.memory_space<vmem>>, vector<128x128xf32>,
    return
  }
  func.func @transform_0(%arg0: i32) -> (i32, i32) {
    %c0_i32 = arith.constant 0 : i32
    %c0_i32_0 = arith.constant 0 : i32
    return %arg0, %c0_i32 : i32, i32
  }
  func.func @transform_1(%arg0: i32) -> (i32, i32) {
    %c0_i32 = arith.constant 0 : i32
    %c0_i32_0 = arith.constant 0 : i32
    return %arg0, %c0_i32 : i32, i32
  }
  func.func @transform_2(%arg0: i32) -> (i32, i32) {
    %c0_i32 = arith.constant 0 : i32
    %c0_i32_0 = arith.constant 0 : i32
    %c0_i32_1 = arith.constant 0 : i32
    return %c0_i32, %c0_i32_0 : i32, i32
  }
  func.func @transform_3(%arg0: i32) -> (i32, i32) {
    %c0_i32 = arith.constant 0 : i32
    %c0_i32_0 = arith.constant 0 : i32
    %c0_i32_1 = arith.constant 0 : i32
    return %c0_i32, %c0_i32_0 : i32, i32
  }
  func.func @transform_4(%arg0: i32) -> (i32, i32) {
    %c0_i32 = arith.constant 0 : i32
    %c0_i32_0 = arith.constant 0 : i32
    %c0_i32_1 = arith.constant 0 : i32
    return %c0_i32, %c0_i32_0 : i32, i32
  }
  func.func @transform_5(%arg0: i32) -> (i32, i32) {
    %c0_i32 = arith.constant 0 : i32
    %c0_i32_0 = arith.constant 0 : i32
    %c0_i32_1 = arith.constant 0 : i32
    return %c0_i32, %c0_i32_0 : i32, i32
  }
  func.func @transform_6(%arg0: i32) -> (i32, i32) {
    %c0_i32 = arith.constant 0 : i32
    %c0_i32_0 = arith.constant 0 : i32
    return %arg0, %c0_i32 : i32, i32
  }
}

</mosaic_0001>

<bundles_post_ra>
// kernel: basic_block_forward.6
= control target key start
LH: loop header
LB: loop body
LE: loop exit
PB: predicated region body
PF: predicated region fallthrough
CT: control target
= control target key end

     0   :  { %s254_s0 = inlined_call_operand.vmem [shape: f32[128,128], index: 0, kind: input, shape index: {}]   ;;  %s255_s1 = inlined_call_operand.vmem [shape: f32[1,128], index: 1, kind: input, shape index: {}]   ;;  %s256_s2 = inlined_call_operand.vmem [shape: f32[1,128], index: 2, kind: input, shape index: {}]   ;;  %s257_s3 = inlined_call_operand.vmem [shape: f32[128,128], index: 3, kind: output, shape index: {}]  }
   0x1   :  { %v14_v0 = vld [vmem:[%s254_s0] sm:$0xff]  ;;  %v15_v4 = vld [vmem:[%s254_s0 + $0x8] sm:$0xff]  ;;  %v16_v5 = vld [vmem:[%s254_s0 + $0x10] sm:$0xff] }
   0x2   :  { %v112_v1 = vld [vmem:[%s255_s1] ss:$0 sm:$0xff]  ;;  %v17_v6 = vld [vmem:[%s254_s0 + $0x18] sm:$0xff]  ;;  %v19_v11 = vld [vmem:[%s254_s0 + $0x28] sm:$0xff] }
   0x3   :  { %v143_v2 = vld [vmem:[%s256_s2] ss:$0 sm:$0xff]  ;;  %v37_v3 = vmul.f32 %v112_v1, %v14_v0  ;;  %v38_v7 = vmul.f32 %v112_v1, %v15_v4  ;;  %v39_v8 = vmul.f32 %v112_v1, %v16_v5  ;;  %v40_v9 = vmul.f32 %v112_v1, %v17_v6  ;;  %v20_v12 = vld [vmem:[%s254_s0 + $0x30] sm:$0xff]  ;;  %v21_v17 = vld [vmem:[%s254_s0 + $0x38] sm:$0xff] }
   0x4   :  { %v18_v10 = vld [vmem:[%s254_s0 + $0x20] sm:$0xff]  ;;  %v42_v15 = vmul.f32 %v112_v1, %v19_v11  ;;  %v43_v16 = vmul.f32 %v112_v1, %v20_v12  ;;  %v44_v21 = vmul.f32 %v112_v1, %v21_v17  ;;  %v23_v27 = vld [vmem:[%s254_s0 + $0x48] sm:$0xff]  ;;  %v24_v28 = vld [vmem:[%s254_s0 + $0x50] sm:$0xff] }
   0x5   :  { %v60_v13 = vadd.f32 %v143_v2, %v37_v3  ;;  %v41_v14 = vmul.f32 %v112_v1, %v18_v10  ;;  %v61_v18 = vadd.f32 %v143_v2, %v38_v7  ;;  %v62_v19 = vadd.f32 %v143_v2, %v39_v8  ;;  %v22_v22 = vld [vmem:[%s254_s0 + $0x40] sm:$0xff]  ;;  %v25_v29 = vld [vmem:[%s254_s0 + $0x58] sm:$0xff]  ;;  %v27_v35 = vld [vmem:[%s254_s0 + $0x68] sm:$0xff] }
   0x6   :  { %v63_v20 = vadd.f32 %v143_v2, %v40_v9  ;;  %v65_v25 = vadd.f32 %v143_v2, %v42_v15  ;;  %v66_v26 = vadd.f32 %v143_v2, %v43_v16  ;;  %v67_v33 = vadd.f32 %v143_v2, %v44_v21  ;;  %v26_v34 = vld [vmem:[%s254_s0 + $0x60] sm:$0xff]  ;;  %v28_v36 = vld [vmem:[%s254_s0 + $0x70] sm:$0xff]  ;;  %v29_v41 = vld [vmem:[%s254_s0 + $0x78] sm:$0xff] }
   0x7   :  { %v76_v23 = vmax.f32 %v60_v13, 0.0  ;;  %v64_v24 = vadd.f32 %v143_v2, %v41_v14  ;;  %v77_v30 = vmax.f32 %v61_v18, 0.0  ;;  %v78_v31 = vmax.f32 %v62_v19, 0.0 }
   0x8   :  { %v79_v32 = vmax.f32 %v63_v20, 0.0  ;;  %v81_v38 = vmax.f32 %v65_v25, 0.0  ;;  %v82_v39 = vmax.f32 %v66_v26, 0.0  ;;  %v45_v40 = vmul.f32 %v112_v1, %v22_v22 }
   0x9   :  { %92 = vst [vmem:[%s257_s3] sm:$0xff] %v76_v23  ;;  %v80_v37 = vmax.f32 %v64_v24, 0.0  ;;  %93 = vst [vmem:[%s257_s3 + $0x8] sm:$0xff] %v77_v30  ;;  %v83_v42 = vmax.f32 %v67_v33, 0.0  ;;  %v46_v43 = vmul.f32 %v112_v1, %v23_v27  ;;  %v47_v44 = vmul.f32 %v112_v1, %v24_v28 }
   0xa   :  { %94 = vst [vmem:[%s257_s3 + $0x10] sm:$0xff] %v78_v31  ;;  %95 = vst [vmem:[%s257_s3 + $0x18] sm:$0xff] %v79_v32  ;;  %v48_v45 = vmul.f32 %v112_v1, %v25_v29  ;;  %v68_v46 = vadd.f32 %v143_v2, %v45_v40  ;;  %v49_v47 = vmul.f32 %v112_v1, %v26_v34 }
   0xb   :  { %96 = vst [vmem:[%s257_s3 + $0x20] sm:$0xff] %v80_v37  ;;  %97 = vst [vmem:[%s257_s3 + $0x28] sm:$0xff] %v81_v38  ;;  %v50_v48 = vmul.f32 %v112_v1, %v27_v35  ;;  %v51_v49 = vmul.f32 %v112_v1, %v28_v36  ;;  %v69_v50 = vadd.f32 %v143_v2, %v46_v43 }
   0xc   :  { %98 = vst [vmem:[%s257_s3 + $0x30] sm:$0xff] %v82_v39  ;;  %99 = vst [vmem:[%s257_s3 + $0x38] sm:$0xff] %v83_v42  ;;  %v70_v51 = vadd.f32 %v143_v2, %v47_v44  ;;  %v71_v52 = vadd.f32 %v143_v2, %v48_v45  ;;  %v52_v53 = vmul.f32 %v112_v1, %v29_v41  ;;  %v84_v54 = vmax.f32 %v68_v46, 0.0 }
   0xd   :  { %v72_v55 = vadd.f32 %v143_v2, %v49_v47  ;;  %v73_v56 = vadd.f32 %v143_v2, %v50_v48  ;;  %v74_v57 = vadd.f32 %v143_v2, %v51_v49  ;;  %v85_v58 = vmax.f32 %v69_v50, 0.0 }
   0xe   :  { %v86_v59 = vmax.f32 %v70_v51, 0.0  ;;  %v87_v60 = vmax.f32 %v71_v52, 0.0  ;;  %v75_v61 = vadd.f32 %v143_v2, %v52_v53  ;;  %100 = vst [vmem:[%s257_s3 + $0x40] sm:$0xff] %v84_v54 }
   0xf   :  { %v88_v62 = vmax.f32 %v72_v55, 0.0  ;;  %v89_v63 = vmax.f32 %v73_v56, 0.0  ;;  %v90_v0 = vmax.f32 %v74_v57, 0.0  ;;  %101 = vst [vmem:[%s257_s3 + $0x48] sm:$0xff] %v85_v58 }
  0x10   :  { %102 = vst [vmem:[%s257_s3 + $0x50] sm:$0xff] %v86_v59  ;;  %103 = vst [vmem:[%s257_s3 + $0x58] sm:$0xff] %v87_v60  ;;  %v91_v1 = vmax.f32 %v75_v61, 0.0 }
  0x11   :  { %104 = vst [vmem:[%s257_s3 + $0x60] sm:$0xff] %v88_v62  ;;  %105 = vst [vmem:[%s257_s3 + $0x68] sm:$0xff] %v89_v63 }
  0x12   :  { %106 = vst [vmem:[%s257_s3 + $0x70] sm:$0xff] %v90_v0  ;;  %107 = vst [vmem:[%s257_s3 + $0x78] sm:$0xff] %v91_v1 }

// kernel: basic_block_forward.5
= control target key start
LH: loop header
LB: loop body
LE: loop exit
PB: predicated region body
PF: predicated region fallthrough
CT: control target
= control target key end

     0   :  { %vm400_vm0 = vcmask 1040384   ;;  %vm402_vm1 = vcmask 1041408   ;;  %s628_s1 = inlined_call_operand.vmem [shape: bf16[128,128], index: 1, kind: input, shape index: {}]   ;;  %s629_s0 = inlined_call_operand.vmem [shape: bf16[128,128], index: 0, kind: input, shape index: {}]   ;;  %s630_s2 = inlined_call_operand.vmem [shape: f32[128,128], index: 2, kind: output, shape index: {0}]   ;;  %s631_s3 = inlined_call_operand.vmem [shape: f32[8,128], index: 3, kind: output, shape index: {1}]  }
   0x1   :  { %v493_v0 = vld [vmem:[%s628_s1] sm:$0xff]   ;;  %v494_v1 = vld [vmem:[%s628_s1 + $0x8] sm:$0xff]   ;;  %v495_v2 = vld [vmem:[%s628_s1 + $0x10] sm:$0xff]  }
   0x2   :  { %445 = vmatprep.subr.bf16.mxu0 %v493_v0  ;;  %477 = vmatprep.subr.bf16.mxu1 %v493_v0  ;;  %v496_v3 = vld [vmem:[%s628_s1 + $0x18] sm:$0xff]   ;;  %v501_v4 = vld [vmem:[%s629_s0] sm:$0xff]   ;;  %v498_v7 = vld [vmem:[%s628_s1 + $0x28] sm:$0xff]  }
   0x3   :  { %446 = vmatpush3.bf16.msra.mxu0 %v493_v0  ;;  %485 = vmatpush3.bf16.msra.mxu1 %v493_v0  ;;  %v497_v5 = vld [vmem:[%s628_s1 + $0x20] sm:$0xff]   ;;  %v499_v8 = vld [vmem:[%s628_s1 + $0x30] sm:$0xff]   ;;  %v500_v9 = vld [vmem:[%s628_s1 + $0x38] sm:$0xff]  }
   0x4   :  { %447 = vmatprep.subr.bf16.mxu0 %v494_v1  ;;  %478 = vmatprep.subr.bf16.mxu1 %v494_v1  ;;  %v505_v6 = vld [vmem:[%s629_s0 + $0x20] sm:$0xff]   ;;  %v502_v10 = vld [vmem:[%s629_s0 + $0x8] sm:$0xff]   ;;  %v503_v12 = vld [vmem:[%s629_s0 + $0x10] sm:$0xff]  }
   0x5   :  { %461 = vmatprep.mubr.bf16.mxu0 %v501_v4  ;;  %469 = vmatprep.mubr.bf16.mxu1 %v505_v6  ;;  %v506_v11 = vld [vmem:[%s629_s0 + $0x28] sm:$0xff]   ;;  %v507_v13 = vld [vmem:[%s629_s0 + $0x30] sm:$0xff]   ;;  %v504_v14 = vld [vmem:[%s629_s0 + $0x18] sm:$0xff]  }
   0x6   :  { %v508_v15 = vld [vmem:[%s629_s0 + $0x38] sm:$0xff]  }
   0x7   :  { %448 = vmatpush3.bf16.msra.mxu0 %v494_v1  ;;  %486 = vmatpush3.bf16.msra.mxu1 %v494_v1 }
   0x8   :  { %449 = vmatprep.subr.bf16.mxu0 %v495_v2  ;;  %479 = vmatprep.subr.bf16.mxu1 %v495_v2 }
   0xb   :  { %450 = vmatpush3.bf16.msra.mxu0 %v495_v2  ;;  %487 = vmatpush3.bf16.msra.mxu1 %v495_v2 }
   0xc   :  { %451 = vmatprep.subr.bf16.mxu0 %v496_v3  ;;  %480 = vmatprep.subr.bf16.mxu1 %v496_v3 }
   0xf   :  { %452 = vmatpush3.bf16.msra.mxu0 %v496_v3  ;;  %488 = vmatpush3.bf16.msra.mxu1 %v496_v3 }
  0x10   :  { %453 = vmatprep.subr.bf16.mxu0 %v497_v5  ;;  %481 = vmatprep.subr.bf16.mxu1 %v497_v5 }
  0x13   :  { %454 = vmatpush3.bf16.msra.mxu0 %v497_v5  ;;  %489 = vmatpush3.bf16.msra.mxu1 %v497_v5 }
  0x14   :  { %455 = vmatprep.subr.bf16.mxu0 %v498_v7  ;;  %482 = vmatprep.subr.bf16.mxu1 %v498_v7 }
  0x17   :  { %456 = vmatpush3.bf16.msra.mxu0 %v498_v7  ;;  %490 = vmatpush3.bf16.msra.mxu1 %v498_v7 }
  0x18   :  { %457 = vmatprep.subr.bf16.mxu0 %v499_v8  ;;  %483 = vmatprep.subr.bf16.mxu1 %v499_v8 }
  0x1b   :  { %458 = vmatpush3.bf16.msra.mxu0 %v499_v8  ;;  %491 = vmatpush3.bf16.msra.mxu1 %v499_v8 }
  0x1c   :  { %459 = vmatprep.subr.bf16.mxu0 %v500_v9  ;;  %484 = vmatprep.subr.bf16.mxu1 %v500_v9 }
  0x1f   :  { %460 = vmatpush3.bf16.msra.mxu0 %v500_v9  ;;  %492 = vmatpush3.bf16.msra.mxu1 %v500_v9 }
  0x22   :  { %462 = vmatmul.mubr.bf16.vlgmr.msra.gmra.mrb[0].mxu0 %v502_v10  ;;  %470 = vmatmul.mubr.bf16.vlgmr.msra.gmra.mrb[0].mxu1 %v506_v11 }
  0x23   :  { %465 = vmatprep.mubr.bf16.mxu0 %v503_v12  ;;  %473 = vmatprep.mubr.bf16.mxu1 %v507_v13 }
  0x2a   :  { %466 = vmatmul.mubr.bf16.gmra.mrb[4].mxu0 %v504_v14  ;;  %474 = vmatmul.mubr.bf16.gmra.mrb[4].mxu1 %v508_v15 }
  0xf5   :  { %v463_v16 = vpop.f32.mrb[0].mxu0  ;;  %v471_v17 = vpop.f32.mrb[0].mxu1 }
  0xf6   :  { %328 = vst [vmem:[%s630_s2 + $0x10] sm:$0xff] %v463_v16  ;;  %v212_v18 = vpop.f32.mrb[1].mxu0  ;;  %336 = vst [vmem:[%s630_s2 + $0x50] sm:$0xff] %v471_v17  ;;  %v244_v19 = vpop.f32.mrb[1].mxu1  ;;  %v365_v27 = vmul.f32 %v463_v16, %v463_v16  ;;  %v373_v59 = vmul.f32 %v471_v17, %v471_v17 }
  0xf7   :  { %326 = vst [vmem:[%s630_s2] sm:$0xff] %v212_v18  ;;  %v464_v20 = vpop.f32.mrb[2].mxu0  ;;  %334 = vst [vmem:[%s630_s2 + $0x40] sm:$0xff] %v244_v19  ;;  %v472_v21 = vpop.f32.mrb[2].mxu1  ;;  %v363_v24 = vmul.f32 %v212_v18, %v212_v18  ;;  %v371_v53 = vmul.f32 %v244_v19, %v244_v19 }
  0xf8   :  { %329 = vst [vmem:[%s630_s2 + $0x18] sm:$0xff] %v464_v20  ;;  %v215_v22 = vpop.f32.mrb[3].mxu0  ;;  %337 = vst [vmem:[%s630_s2 + $0x58] sm:$0xff] %v472_v21  ;;  %v247_v23 = vpop.f32.mrb[3].mxu1  ;;  %v366_v30 = vmul.f32 %v464_v20, %v464_v20  ;;  %v374_v62 = vmul.f32 %v472_v21, %v472_v21 }
  0xf9   :  { %327 = vst [vmem:[%s630_s2 + $0x8] sm:$0xff] %v215_v22  ;;  %v342_v25 = vadd.f32 %v215_v22, %v212_v18  ;;  %v364_v26 = vmul.f32 %v215_v22, %v215_v22  ;;  %335 = vst [vmem:[%s630_s2 + $0x48] sm:$0xff] %v247_v23  ;;  %v372_v58 = vmul.f32 %v247_v23, %v247_v23 }
  0xfb   :  { %v343_v28 = vadd.f32 %v463_v16, %v342_v25  ;;  %v379_v29 = vadd.f32 %v364_v26, %v363_v24 }
  0xfd   :  { %v380_v31 = vadd.f32 %v379_v29, %v365_v27  ;;  %v467_v32 = vpop.f32.mrb[4].mxu0  ;;  %v344_v33 = vadd.f32 %v464_v20, %v343_v28  ;;  %v475_v34 = vpop.f32.mrb[4].mxu1 }
  0xfe   :  { %332 = vst [vmem:[%s630_s2 + $0x30] sm:$0xff] %v467_v32  ;;  %v228_v35 = vpop.f32.mrb[5].mxu0  ;;  %340 = vst [vmem:[%s630_s2 + $0x70] sm:$0xff] %v475_v34  ;;  %v260_v36 = vpop.f32.mrb[5].mxu1  ;;  %v369_v47 = vmul.f32 %v467_v32, %v467_v32  ;;  %v377_v7 = vmul.f32 %v475_v34, %v475_v34 }
  0xff   :  { %330 = vst [vmem:[%s630_s2 + $0x20] sm:$0xff] %v228_v35  ;;  %v345_v37 = vadd.f32 %v344_v33, %v228_v35  ;;  %v367_v38 = vmul.f32 %v228_v35, %v228_v35  ;;  %v381_v39 = vadd.f32 %v380_v31, %v366_v30  ;;  %v468_v40 = vpop.f32.mrb[6].mxu0  ;;  %338 = vst [vmem:[%s630_s2 + $0x60] sm:$0xff] %v260_v36  ;;  %v476_v41 = vpop.f32.mrb[6].mxu1 }
 0x100   :  { %333 = vst [vmem:[%s630_s2 + $0x38] sm:$0xff] %v468_v40  ;;  %v231_v42 = vpop.f32.mrb[7].mxu0  ;;  %341 = vst [vmem:[%s630_s2 + $0x78] sm:$0xff] %v476_v41  ;;  %v263_v43 = vpop.f32.mrb[7].mxu1  ;;  %v370_v50 = vmul.f32 %v468_v40, %v468_v40  ;;  %v375_v1 = vmul.f32 %v260_v36, %v260_v36  ;;  %v378_v10 = vmul.f32 %v476_v41, %v476_v41 }
 0x101   :  { %v382_v44 = vadd.f32 %v381_v39, %v367_v38  ;;  %331 = vst [vmem:[%s630_s2 + $0x28] sm:$0xff] %v231_v42  ;;  %v346_v45 = vadd.f32 %v345_v37, %v231_v42  ;;  %v368_v46 = vmul.f32 %v231_v42, %v231_v42  ;;  %339 = vst [vmem:[%s630_s2 + $0x68] sm:$0xff] %v263_v43 }
 0x102   :  { %v376_v6 = vmul.f32 %v263_v43, %v263_v43 }
 0x103   :  { %v347_v48 = vadd.f32 %v467_v32, %v346_v45  ;;  %v383_v49 = vadd.f32 %v382_v44, %v368_v46 }
 0x105   :  { %v384_v51 = vadd.f32 %v383_v49, %v369_v47  ;;  %v348_v52 = vadd.f32 %v468_v40, %v347_v48 }
 0x107   :  { %v349_v54 = vadd.f32 %v348_v52, %v244_v19  ;;  %v385_v55 = vadd.f32 %v384_v51, %v370_v50 }
 0x109   :  { %v386_v56 = vadd.f32 %v385_v55, %v371_v53  ;;  %v350_v57 = vadd.f32 %v349_v54, %v247_v23 }
 0x10b   :  { %v351_v60 = vadd.f32 %v471_v17, %v350_v57  ;;  %v387_v61 = vadd.f32 %v386_v56, %v372_v58 }
 0x10d   :  { %v388_v63 = vadd.f32 %v387_v61, %v373_v59  ;;  %v352_v0 = vadd.f32 %v472_v21, %v351_v60 }
 0x10f   :  { %v353_v2 = vadd.f32 %v352_v0, %v260_v36  ;;  %v389_v3 = vadd.f32 %v388_v63, %v374_v62 }
 0x111   :  { %v390_v4 = vadd.f32 %v389_v3, %v375_v1  ;;  %v354_v5 = vadd.f32 %v353_v2, %v263_v43 }
 0x113   :  { %v355_v8 = vadd.f32 %v475_v34, %v354_v5  ;;  %v391_v9 = vadd.f32 %v390_v4, %v376_v6 }
 0x115   :  { %v356_v11 = vadd.f32 %v476_v41, %v355_v8  ;;  %v392_v12 = vadd.f32 %v391_v9, %v377_v7 }
 0x117   :  { %v357_v13 = vrot.slane %v356_v11, 4  ;;  %v393_v14 = vadd.f32 %v392_v12, %v378_v10 }
 0x119   :  { %v358_v15 = vadd.f32 %v357_v13, %v356_v11  ;;  %v394_v16 = vrot.slane %v393_v14, 4 }
 0x11b   :  { %v359_v17 = vrot.slane %v358_v15, 2  ;;  %v395_v18 = vadd.f32 %v394_v16, %v393_v14 }
 0x11d   :  { %v360_v19 = vadd.f32 %v359_v17, %v358_v15  ;;  %v396_v20 = vrot.slane %v395_v18, 2 }
 0x11f   :  { %v361_v21 = vrot.slane %v360_v19, 1  ;;  %v397_v22 = vadd.f32 %v396_v20, %v395_v18 }
 0x121   :  { %v398_v23 = vrot.slane %v397_v22, 1  ;;  %v362_v24 = vadd.f32 %v361_v21, %v360_v19 }
 0x123   :  { %v399_v25 = vadd.f32 %v398_v23, %v397_v22 }
 0x125   :  { %v401_v26 = vsel %vm400_vm0, %v362_v24, %v399_v25 }
 0x126   :  { %v403_v27 = vsel %vm402_vm1, %v401_v26, 0.0 }
 0x127   :  { %404 = vst [vmem:[%s631_s3] sm:$0xff] %v403_v27 }

// kernel: basic_block_forward.9
= control target key start
LH: loop header
LB: loop body
LE: loop exit
PB: predicated region body
PF: predicated region fallthrough
CT: control target
= control target key end

     0   :  { %s466_s0 = inlined_call_operand.vmem [shape: f32[128,128], index: 0, kind: input, shape index: {}]   ;;  %s467_s1 = inlined_call_operand.vmem [shape: f32[128,128], index: 1, kind: input, shape index: {}]   ;;  %s468_s2 = inlined_call_operand.vmem [shape: f32[1,128], index: 2, kind: input, shape index: {}]   ;;  %s469_s3 = inlined_call_operand.vmem [shape: f32[1,128], index: 3, kind: input, shape index: {}]   ;;  %s470_s4 = inlined_call_operand.vmem [shape: f32[1,128], index: 4, kind: input, shape index: {}]   ;;  %s471_s5 = inlined_call_operand.vmem [shape: f32[1,128], index: 5, kind: input, shape index: {}]   ;;  %s472_s6 = inlined_call_operand.vmem [shape: f32[128,128], index: 6, kind: output, shape index: {}]  }
   0x1   :  { %v23_v0 = vld [vmem:[%s466_s0] sm:$0xff]  ;;  %v24_v8 = vld [vmem:[%s466_s0 + $0x8] sm:$0xff]  ;;  %v25_v10 = vld [vmem:[%s466_s0 + $0x10] sm:$0xff] }
   0x2   :  { %v244_v1 = vld [vmem:[%s468_s2] ss:$0 sm:$0xff]  ;;  %v86_v9 = vld [vmem:[%s467_s1 + $0x8] sm:$0xff]  ;;  %v87_v15 = vld [vmem:[%s467_s1 + $0x10] sm:$0xff] }
   0x3   :  { %v249_v2 = vld [vmem:[%s469_s3] ss:$0 sm:$0xff]  ;;  %v46_v3 = vmul.f32 %v244_v1, %v23_v0  ;;  %v47_v12 = vmul.f32 %v244_v1, %v24_v8  ;;  %v48_v14 = vmul.f32 %v244_v1, %v25_v10  ;;  %v26_v16 = vld [vmem:[%s466_s0 + $0x18] sm:$0xff]  ;;  %v28_v24 = vld [vmem:[%s466_s0 + $0x28] sm:$0xff] }
   0x4   :  { %v85_v4 = vld [vmem:[%s467_s1] sm:$0xff]  ;;  %v88_v17 = vld [vmem:[%s467_s1 + $0x18] sm:$0xff]  ;;  %v49_v20 = vmul.f32 %v244_v1, %v26_v16  ;;  %v90_v29 = vld [vmem:[%s467_s1 + $0x28] sm:$0xff]  ;;  %v51_v38 = vmul.f32 %v244_v1, %v28_v24 }
   0x5   :  { %v258_v5 = vld [vmem:[%s470_s4] ss:$0 sm:$0xff]  ;;  %v69_v11 = vadd.f32 %v249_v2, %v46_v3  ;;  %v70_v25 = vadd.f32 %v249_v2, %v47_v12  ;;  %v71_v27 = vadd.f32 %v249_v2, %v48_v14  ;;  %v29_v34 = vld [vmem:[%s466_s0 + $0x30] sm:$0xff]  ;;  %v30_v44 = vld [vmem:[%s466_s0 + $0x38] sm:$0xff] }
   0x6   :  { %v263_v6 = vld [vmem:[%s471_s5] ss:$0 sm:$0xff]  ;;  %v108_v7 = vmul.f32 %v258_v5, %v85_v4  ;;  %v109_v13 = vmul.f32 %v258_v5, %v86_v9  ;;  %v110_v19 = vmul.f32 %v258_v5, %v87_v15  ;;  %v111_v21 = vmul.f32 %v258_v5, %v88_v17  ;;  %v91_v39 = vld [vmem:[%s467_s1 + $0x30] sm:$0xff]  ;;  %v92_v45 = vld [vmem:[%s467_s1 + $0x38] sm:$0xff] }
   0x7   :  { %v27_v22 = vld [vmem:[%s466_s0 + $0x20] sm:$0xff]  ;;  %v72_v32 = vadd.f32 %v249_v2, %v49_v20  ;;  %v113_v43 = vmul.f32 %v258_v5, %v90_v29  ;;  %v74_v48 = vadd.f32 %v249_v2, %v51_v38  ;;  %v52_v49 = vmul.f32 %v244_v1, %v29_v34  ;;  %v32_v56 = vld [vmem:[%s466_s0 + $0x48] sm:$0xff]  ;;  %v33_v4 = vld [vmem:[%s466_s0 + $0x50] sm:$0xff] }
   0x8   :  { %v131_v18 = vadd.f32 %v263_v6, %v108_v7  ;;  %v89_v23 = vld [vmem:[%s467_s1 + $0x20] sm:$0xff]  ;;  %v132_v26 = vadd.f32 %v263_v6, %v109_v13  ;;  %v50_v28 = vmul.f32 %v244_v1, %v27_v22  ;;  %v133_v31 = vadd.f32 %v263_v6, %v110_v19  ;;  %v94_v3 = vld [vmem:[%s467_s1 + $0x48] sm:$0xff]  ;;  %v34_v12 = vld [vmem:[%s466_s0 + $0x58] sm:$0xff] }
   0x9   :  { %v134_v33 = vadd.f32 %v263_v6, %v111_v21  ;;  %v112_v37 = vmul.f32 %v258_v5, %v89_v23  ;;  %v31_v50 = vld [vmem:[%s466_s0 + $0x40] sm:$0xff]  ;;  %v136_v54 = vadd.f32 %v263_v6, %v113_v43  ;;  %v114_v55 = vmul.f32 %v258_v5, %v91_v39  ;;  %v96_v17 = vld [vmem:[%s467_s1 + $0x58] sm:$0xff]  ;;  %v37_v34 = vld [vmem:[%s466_s0 + $0x70] sm:$0xff] }
   0xa   :  { %v147_v30 = vadd.f32 %v131_v18, %v69_v11  ;;  %v148_v35 = vadd.f32 %v132_v26, %v70_v25  ;;  %v73_v36 = vadd.f32 %v249_v2, %v50_v28  ;;  %v149_v41 = vadd.f32 %v133_v31, %v71_v27  ;;  %v93_v51 = vld [vmem:[%s467_s1 + $0x40] sm:$0xff]  ;;  %v95_v11 = vld [vmem:[%s467_s1 + $0x50] sm:$0xff]  ;;  %v36_v28 = vld [vmem:[%s466_s0 + $0x68] sm:$0xff] }
   0xb   :  { %v150_v42 = vadd.f32 %v134_v33, %v72_v32  ;;  %v135_v47 = vadd.f32 %v263_v6, %v112_v37  ;;  %v75_v58 = vadd.f32 %v249_v2, %v52_v49  ;;  %v53_v59 = vmul.f32 %v244_v1, %v30_v44  ;;  %v35_v22 = vld [vmem:[%s466_s0 + $0x60] sm:$0xff]  ;;  %v98_v33 = vld [vmem:[%s467_s1 + $0x68] sm:$0xff]  ;;  %v99_v43 = vld [vmem:[%s467_s1 + $0x70] sm:$0xff] }
   0xc   :  { %v163_v40 = vmax.f32 %v147_v30, 0.0  ;;  %v164_v46 = vmax.f32 %v148_v35, 0.0  ;;  %v165_v52 = vmax.f32 %v149_v41, 0.0  ;;  %v115_v60 = vmul.f32 %v258_v5, %v92_v45  ;;  %v97_v27 = vld [vmem:[%s467_s1 + $0x60] sm:$0xff]  ;;  %v100_v49 = vld [vmem:[%s467_s1 + $0x78] sm:$0xff] }
   0xd   :  { %v166_v53 = vmax.f32 %v150_v42, 0.0  ;;  %v151_v57 = vadd.f32 %v135_v47, %v73_v36  ;;  %v152_v61 = vadd.f32 %v136_v54, %v74_v48  ;;  %v137_v62 = vadd.f32 %v263_v6, %v114_v55  ;;  %v38_v48 = vld [vmem:[%s466_s0 + $0x78] sm:$0xff] }
   0xe   :  { %179 = vst [vmem:[%s472_s6] sm:$0xff] %v163_v40  ;;  %180 = vst [vmem:[%s472_s6 + $0x8] sm:$0xff] %v164_v46  ;;  %v54_v63 = vmul.f32 %v244_v1, %v31_v50  ;;  %v116_v0 = vmul.f32 %v258_v5, %v93_v51  ;;  %v76_v8 = vadd.f32 %v249_v2, %v53_v59 }
   0xf   :  { %181 = vst [vmem:[%s472_s6 + $0x10] sm:$0xff] %v165_v52  ;;  %182 = vst [vmem:[%s472_s6 + $0x18] sm:$0xff] %v166_v53  ;;  %v167_v7 = vmax.f32 %v151_v57, 0.0  ;;  %v138_v9 = vadd.f32 %v263_v6, %v115_v60  ;;  %v55_v10 = vmul.f32 %v244_v1, %v32_v56  ;;  %v168_v13 = vmax.f32 %v152_v61, 0.0 }
  0x10   :  { %v153_v14 = vadd.f32 %v137_v62, %v75_v58  ;;  %v77_v15 = vadd.f32 %v249_v2, %v54_v63  ;;  %v139_v16 = vadd.f32 %v263_v6, %v116_v0  ;;  %v117_v20 = vmul.f32 %v258_v5, %v94_v3 }
  0x11   :  { %183 = vst [vmem:[%s472_s6 + $0x20] sm:$0xff] %v167_v7  ;;  %v154_v18 = vadd.f32 %v138_v9, %v76_v8  ;;  %v78_v19 = vadd.f32 %v249_v2, %v55_v10  ;;  %v56_v21 = vmul.f32 %v244_v1, %v33_v4  ;;  %184 = vst [vmem:[%s472_s6 + $0x28] sm:$0xff] %v168_v13 }
  0x12   :  { %v169_v23 = vmax.f32 %v153_v14, 0.0  ;;  %v155_v24 = vadd.f32 %v139_v16, %v77_v15  ;;  %v118_v25 = vmul.f32 %v258_v5, %v95_v11  ;;  %v57_v26 = vmul.f32 %v244_v1, %v34_v12 }
  0x13   :  { %v170_v29 = vmax.f32 %v154_v18, 0.0  ;;  %v140_v30 = vadd.f32 %v263_v6, %v117_v20  ;;  %v79_v31 = vadd.f32 %v249_v2, %v56_v21  ;;  %v119_v32 = vmul.f32 %v258_v5, %v96_v17 }
  0x14   :  { %185 = vst [vmem:[%s472_s6 + $0x30] sm:$0xff] %v169_v23  ;;  %v171_v35 = vmax.f32 %v155_v24, 0.0  ;;  %v141_v36 = vadd.f32 %v263_v6, %v118_v25  ;;  %v80_v37 = vadd.f32 %v249_v2, %v57_v26  ;;  %v58_v38 = vmul.f32 %v244_v1, %v35_v22 }
  0x15   :  { %186 = vst [vmem:[%s472_s6 + $0x38] sm:$0xff] %v170_v29  ;;  %v156_v39 = vadd.f32 %v140_v30, %v78_v19  ;;  %v142_v40 = vadd.f32 %v263_v6, %v119_v32  ;;  %v120_v41 = vmul.f32 %v258_v5, %v97_v27  ;;  %v59_v42 = vmul.f32 %v244_v1, %v36_v28 }
  0x16   :  { %187 = vst [vmem:[%s472_s6 + $0x40] sm:$0xff] %v171_v35  ;;  %v157_v44 = vadd.f32 %v141_v36, %v79_v31  ;;  %v81_v45 = vadd.f32 %v249_v2, %v58_v38  ;;  %v121_v46 = vmul.f32 %v258_v5, %v98_v33  ;;  %v60_v47 = vmul.f32 %v244_v1, %v37_v34 }
  0x17   :  { %v172_v50 = vmax.f32 %v156_v39, 0.0  ;;  %v158_v51 = vadd.f32 %v142_v40, %v80_v37  ;;  %v143_v52 = vadd.f32 %v263_v6, %v120_v41  ;;  %v82_v53 = vadd.f32 %v249_v2, %v59_v42 }
  0x18   :  { %v173_v54 = vmax.f32 %v157_v44, 0.0  ;;  %v144_v55 = vadd.f32 %v263_v6, %v121_v46  ;;  %v83_v56 = vadd.f32 %v249_v2, %v60_v47  ;;  %v122_v57 = vmul.f32 %v258_v5, %v99_v43 }
  0x19   :  { %188 = vst [vmem:[%s472_s6 + $0x48] sm:$0xff] %v172_v50  ;;  %v174_v58 = vmax.f32 %v158_v51, 0.0  ;;  %v159_v59 = vadd.f32 %v143_v52, %v81_v45  ;;  %v61_v60 = vmul.f32 %v244_v1, %v38_v48  ;;  %v123_v61 = vmul.f32 %v258_v5, %v100_v49 }
  0x1a   :  { %189 = vst [vmem:[%s472_s6 + $0x50] sm:$0xff] %v173_v54  ;;  %v160_v62 = vadd.f32 %v144_v55, %v82_v53  ;;  %v145_v63 = vadd.f32 %v263_v6, %v122_v57 }
  0x1b   :  { %190 = vst [vmem:[%s472_s6 + $0x58] sm:$0xff] %v174_v58  ;;  %v175_v0 = vmax.f32 %v159_v59, 0.0  ;;  %v84_v3 = vadd.f32 %v249_v2, %v61_v60  ;;  %v146_v4 = vadd.f32 %v263_v6, %v123_v61 }
  0x1c   :  { %v176_v7 = vmax.f32 %v160_v62, 0.0  ;;  %v161_v1 = vadd.f32 %v145_v63, %v83_v56 }
  0x1d   :  { %191 = vst [vmem:[%s472_s6 + $0x60] sm:$0xff] %v175_v0  ;;  %v162_v5 = vadd.f32 %v146_v4, %v84_v3 }
  0x1e   :  { %192 = vst [vmem:[%s472_s6 + $0x68] sm:$0xff] %v176_v7  ;;  %v177_v8 = vmax.f32 %v161_v1, 0.0 }
  0x1f   :  { %v178_v9 = vmax.f32 %v162_v5, 0.0 }
  0x20   :  { %193 = vst [vmem:[%s472_s6 + $0x70] sm:$0xff] %v177_v8 }
  0x21   :  { %194 = vst [vmem:[%s472_s6 + $0x78] sm:$0xff] %v178_v9 }

</bundles_post_ra>
